<compile_context>
chip_gen: v6e
topology: v6e:2x2x1
jax: 0.10.0
libtpu: 0.0.40
codegen_flags: <defaults>
</compile_context>

<pallas_src>
from typing import Callable, Optional

import jax
import jax.numpy as jnp
from jax.experimental import io_callback
from jax.experimental import pallas as pl
from jax.experimental.pallas import tpu as pltpu

_MAX_INFLIGHT_DMAS = 4  # a few outstanding HBM->HBM copies saturate the DMA engines


def _make_dma_identity_kernel(nchunks: int):
    """HBM->HBM identity copy: start one DMA per chunk (all in flight), then wait."""

    def kernel(x_hbm, o_hbm, sems):
        # nchunks <= _MAX_INFLIGHT_DMAS, so a static unroll is fine.
        for c in range(nchunks):
            pltpu.make_async_copy(x_hbm.at[c], o_hbm.at[c], sems.at[c]).start()
        for c in range(nchunks):
            pltpu.make_async_copy(x_hbm.at[c], o_hbm.at[c], sems.at[c]).wait()

    return kernel


def _pick_num_chunks(total_elems: int) -> int:
    """Largest chunk count <= _MAX_INFLIGHT_DMAS that divides the element count."""
    for n in range(min(_MAX_INFLIGHT_DMAS, total_elems), 1, -1):
        if total_elems % n == 0:
            return n
    return 1


def _materialize_copy(x: jax.Array) -> jax.Array:
    """Exact copy of x into a fresh HBM buffer via chunked HBM->HBM DMA."""
    if x.size == 0:
        return x
    nchunks = _pick_num_chunks(x.size)
    x2d = x.reshape(nchunks, x.size // nchunks)

    out2d = pl.pallas_call(
        _make_dma_identity_kernel(nchunks),
        out_shape=jax.ShapeDtypeStruct(x2d.shape, x.dtype),
        in_specs=[pl.BlockSpec(memory_space=pl.ANY)],   # raw HBM ref, no auto-DMA
        out_specs=pl.BlockSpec(memory_space=pl.ANY),    # raw HBM ref, written by DMA
        scratch_shapes=[pltpu.SemaphoreType.DMA((nchunks,))],
    )(x2d)
    return out2d.reshape(x.shape)


def callback_layer(x: jax.Array,
                   op: Optional[Callable] = None,
                   *,
                   summarize: Optional[Callable] = None,
                   ordered: bool = False,
                   materialize: bool = False) -> jax.Array:
    """Pallas/JAX implementation of CallbackLayer.forward.

    Executes `op(payload)` as a host callback for its side effect, then returns
    x unchanged.

    Args:
      op: host-side callable (e.g. print / logger). Side effect only.
      summarize: optional on-device reduction (e.g. jnp.sum); if given, only its
        (scalar) result is shipped to the host callback instead of the full tensor.
      ordered: use io_callback(ordered=True) when program-order host effects are
        required; default uses the cheaper, unordered jax.debug.callback.
      materialize: if True, return a freshly materialized copy of x produced by
        the chunked HBM->HBM DMA kernel. Default (False) returns x directly --
        an identity needs no HBM traffic at all.
    """
    if op is not None:
        payload = x if summarize is None else summarize(x)
        if ordered:
            io_callback(op, None, payload, ordered=True)
        else:
            jax.debug.callback(op, payload)

    if not materialize:
        return x  # zero-copy identity: the dominant fast path
    return _materialize_copy(x)


if __name__ == "__main__":
    key = jax.random.PRNGKey(0)
    x = jax.random.normal(key, (2, 4, 16, 16), dtype=jnp.float32)  # NCHW

    observed = []

    def op(arr):
        observed.append(float(jnp.sum(arr)))

    # 1) Default fast path: host callback fires, x returned unchanged, no kernel / no copy.
    y = jax.block_until_ready(callback_layer(x, op))
    assert y.shape == x.shape and y.dtype == x.dtype
    assert bool(jnp.all(y == x))

    # 2) Device-side summary path: only a scalar crosses device->host.
    summaries = []
    y2 = jax.block_until_ready(
        callback_layer(x, lambda s: summaries.append(float(s)), summarize=jnp.sum))
    assert bool(jnp.all(y2 == x))

    # 3) Materialized identity via the chunked HBM->HBM DMA Pallas kernel.
    y3 = jax.block_until_ready(callback_layer(x, op, materialize=True))
    assert y3.shape == x.shape and y3.dtype == x.dtype
    assert bool(jnp.all(y3 == x))

    # 4) Odd, non-128-divisible shape also goes through the DMA kernel (no fallback asymmetry).
    x_odd = jax.random.normal(jax.random.PRNGKey(1), (3, 5, 7), dtype=jnp.float32)
    y4 = jax.block_until_ready(callback_layer(x_odd, materialize=True))
    assert y4.shape == x_odd.shape and bool(jnp.all(y4 == x_odd))

    # Ensure the runtime host callbacks actually fired.
    jax.effects_barrier()
    assert len(observed) == 2, observed      # fired in (1) and (3)
    assert len(summaries) == 1, summaries    # fired in (2)
    assert abs(observed[0] - summaries[0]) < 1e-3

    print("KERNEL_OK")
</pallas_src>

<mosaic_0001>
module attributes {stable_mosaic.version = 11 : i64} {
  func.func @kernel(%arg0: memref<4x512xf32, #tpu.memory_space<any>>, %arg1: memref<4x512xf32, #tpu.memory_space<any>>, %arg2: memref<4x!tpu.dma_semaphore, #tpu.memory_space<semaphore_mem>>) attributes {dimension_semantics = [], scalar_prefetch = 0 : i64, scratch_operands = 1 : i64, tpu.core_type = #tpu.core_type<tc>} {
    %c0_i32 = arith.constant 0 : i32
    %c0_i32_0 = arith.constant 0 : i32
    %c0_i32_1 = arith.constant 0 : i32
    %c0_i32_2 = arith.constant 0 : i32
    %0 = tpu.memref_slice %arg0[%c0_i32, %c0_i32_2] : memref<4x512xf32, #tpu.memory_space<any>> -> memref<1x512xf32, #tpu.memory_space<any>>
    %1 = tpu.memref_squeeze %0 : memref<1x512xf32, #tpu.memory_space<any>> -> memref<512xf32, #tpu.memory_space<any>>
    %c0_i32_3 = arith.constant 0 : i32
    %2 = tpu.memref_slice %arg1[%c0_i32_0, %c0_i32_3] : memref<4x512xf32, #tpu.memory_space<any>> -> memref<1x512xf32, #tpu.memory_space<any>>
    %3 = tpu.memref_squeeze %2 : memref<1x512xf32, #tpu.memory_space<any>> -> memref<512xf32, #tpu.memory_space<any>>
    %4 = tpu.memref_slice %arg2[%c0_i32_1] : memref<4x!tpu.dma_semaphore, #tpu.memory_space<semaphore_mem>> -> memref<1x!tpu.dma_semaphore, #tpu.memory_space<semaphore_mem>>
    %5 = tpu.memref_squeeze %4 : memref<1x!tpu.dma_semaphore, #tpu.memory_space<semaphore_mem>> -> memref<!tpu.dma_semaphore, #tpu.memory_space<semaphore_mem>>
    tpu.enqueue_dma source(%1 : memref<512xf32, #tpu.memory_space<any>>) target(%3 : memref<512xf32, #tpu.memory_space<any>>) target_semaphore(%5 : memref<!tpu.dma_semaphore, #tpu.memory_space<semaphore_mem>>)
    %c1_i32 = arith.constant 1 : i32
    %c1_i32_4 = arith.constant 1 : i32
    %c1_i32_5 = arith.constant 1 : i32
    %c0_i32_6 = arith.constant 0 : i32
    %6 = tpu.memref_slice %arg0[%c1_i32, %c0_i32_6] : memref<4x512xf32, #tpu.memory_space<any>> -> memref<1x512xf32, #tpu.memory_space<any>>
    %7 = tpu.memref_squeeze %6 : memref<1x512xf32, #tpu.memory_space<any>> -> memref<512xf32, #tpu.memory_space<any>>
    %c0_i32_7 = arith.constant 0 : i32
    %8 = tpu.memref_slice %arg1[%c1_i32_4, %c0_i32_7] : memref<4x512xf32, #tpu.memory_space<any>> -> memref<1x512xf32, #tpu.memory_space<any>>
    %9 = tpu.memref_squeeze %8 : memref<1x512xf32, #tpu.memory_space<any>> -> memref<512xf32, #tpu.memory_space<any>>
    %10 = tpu.memref_slice %arg2[%c1_i32_5] : memref<4x!tpu.dma_semaphore, #tpu.memory_space<semaphore_mem>> -> memref<1x!tpu.dma_semaphore, #tpu.memory_space<semaphore_mem>>
    %11 = tpu.memref_squeeze %10 : memref<1x!tpu.dma_semaphore, #tpu.memory_space<semaphore_mem>> -> memref<!tpu.dma_semaphore, #tpu.memory_space<semaphore_mem>>
    tpu.enqueue_dma source(%7 : memref<512xf32, #tpu.memory_space<any>>) target(%9 : memref<512xf32, #tpu.memory_space<any>>) target_semaphore(%11 : memref<!tpu.dma_semaphore, #tpu.memory_space<semaphore_mem>>)
    %c2_i32 = arith.constant 2 : i32
    %c2_i32_8 = arith.constant 2 : i32
    %c2_i32_9 = arith.constant 2 : i32
    %c0_i32_10 = arith.constant 0 : i32
    %12 = tpu.memref_slice %arg0[%c2_i32, %c0_i32_10] : memref<4x512xf32, #tpu.memory_space<any>> -> memref<1x512xf32, #tpu.memory_space<any>>
    %13 = tpu.memref_squeeze %12 : memref<1x512xf32, #tpu.memory_space<any>> -> memref<512xf32, #tpu.memory_space<any>>
    %c0_i32_11 = arith.constant 0 : i32
    %14 = tpu.memref_slice %arg1[%c2_i32_8, %c0_i32_11] : memref<4x512xf32, #tpu.memory_space<any>> -> memref<1x512xf32, #tpu.memory_space<any>>
    %15 = tpu.memref_squeeze %14 : memref<1x512xf32, #tpu.memory_space<any>> -> memref<512xf32, #tpu.memory_space<any>>
    %16 = tpu.memref_slice %arg2[%c2_i32_9] : memref<4x!tpu.dma_semaphore, #tpu.memory_space<semaphore_mem>> -> memref<1x!tpu.dma_semaphore, #tpu.memory_space<semaphore_mem>>
    %17 = tpu.memref_squeeze %16 : memref<1x!tpu.dma_semaphore, #tpu.memory_space<semaphore_mem>> -> memref<!tpu.dma_semaphore, #tpu.memory_space<semaphore_mem>>
    tpu.enqueue_dma source(%13 : memref<512xf32, #tpu.memory_space<any>>) target(%15 : memref<512xf32, #tpu.memory_space<any>>) target_semaphore(%17 : memref<!tpu.dma_semaphore, #tpu.memory_space<semaphore_mem>>)
    %c3_i32 = arith.constant 3 : i32
    %c3_i32_12 = arith.constant 3 : i32
    %c3_i32_13 = arith.constant 3 : i32
    %c0_i32_14 = arith.constant 0 : i32
    %18 = tpu.memref_slice %arg0[%c3_i32, %c0_i32_14] : memref<4x512xf32, #tpu.memory_space<any>> -> memref<1x512xf32, #tpu.memory_space<any>>
    %19 = tpu.memref_squeeze %18 : memref<1x512xf32, #tpu.memory_space<any>> -> memref<512xf32, #tpu.memory_space<any>>
    %c0_i32_15 = arith.constant 0 : i32
    %20 = tpu.memref_slice %arg1[%c3_i32_12, %c0_i32_15] : memref<4x512xf32, #tpu.memory_space<any>> -> memref<1x512xf32, #tpu.memory_space<any>>
    %21 = tpu.memref_squeeze %20 : memref<1x512xf32, #tpu.memory_space<any>> -> memref<512xf32, #tpu.memory_space<any>>
    %22 = tpu.memref_slice %arg2[%c3_i32_13] : memref<4x!tpu.dma_semaphore, #tpu.memory_space<semaphore_mem>> -> memref<1x!tpu.dma_semaphore, #tpu.memory_space<semaphore_mem>>
    %23 = tpu.memref_squeeze %22 : memref<1x!tpu.dma_semaphore, #tpu.memory_space<semaphore_mem>> -> memref<!tpu.dma_semaphore, #tpu.memory_space<semaphore_mem>>
    tpu.enqueue_dma source(%19 : memref<512xf32, #tpu.memory_space<any>>) target(%21 : memref<512xf32, #tpu.memory_space<any>>) target_semaphore(%23 : memref<!tpu.dma_semaphore, #tpu.memory_space<semaphore_mem>>)
    %c0_i32_16 = arith.constant 0 : i32
    %c0_i32_17 = arith.constant 0 : i32
    %c0_i32_18 = arith.constant 0 : i32
    %c0_i32_19 = arith.constant 0 : i32
    %24 = tpu.memref_slice %arg0[%c0_i32_16, %c0_i32_19] : memref<4x512xf32, #tpu.memory_space<any>> -> memref<1x512xf32, #tpu.memory_space<any>>
    %25 = tpu.memref_squeeze %24 : memref<1x512xf32, #tpu.memory_space<any>> -> memref<512xf32, #tpu.memory_space<any>>
    %c0_i32_20 = arith.constant 0 : i32
    %26 = tpu.memref_slice %arg1[%c0_i32_17, %c0_i32_20] : memref<4x512xf32, #tpu.memory_space<any>> -> memref<1x512xf32, #tpu.memory_space<any>>
    %27 = tpu.memref_squeeze %26 : memref<1x512xf32, #tpu.memory_space<any>> -> memref<512xf32, #tpu.memory_space<any>>
    %28 = tpu.memref_slice %arg2[%c0_i32_18] : memref<4x!tpu.dma_semaphore, #tpu.memory_space<semaphore_mem>> -> memref<1x!tpu.dma_semaphore, #tpu.memory_space<semaphore_mem>>
    %29 = tpu.memref_squeeze %28 : memref<1x!tpu.dma_semaphore, #tpu.memory_space<semaphore_mem>> -> memref<!tpu.dma_semaphore, #tpu.memory_space<semaphore_mem>>
    tpu.wait_dma2 semaphore(%29 : memref<!tpu.dma_semaphore, #tpu.memory_space<semaphore_mem>>) src(%25 : memref<512xf32, #tpu.memory_space<any>>) dst(%27 : memref<512xf32, #tpu.memory_space<any>>)
    %c1_i32_21 = arith.constant 1 : i32
    %c1_i32_22 = arith.constant 1 : i32
    %c1_i32_23 = arith.constant 1 : i32
    %c0_i32_24 = arith.constant 0 : i32
    %30 = tpu.memref_slice %arg0[%c1_i32_21, %c0_i32_24] : memref<4x512xf32, #tpu.memory_space<any>> -> memref<1x512xf32, #tpu.memory_space<any>>
    %31 = tpu.memref_squeeze %30 : memref<1x512xf32, #tpu.memory_space<any>> -> memref<512xf32, #tpu.memory_space<any>>
    %c0_i32_25 = arith.constant 0 : i32
    %32 = tpu.memref_slice %arg1[%c1_i32_22, %c0_i32_25] : memref<4x512xf32, #tpu.memory_space<any>> -> memref<1x512xf32, #tpu.memory_space<any>>
    %33 = tpu.memref_squeeze %32 : memref<1x512xf32, #tpu.memory_space<any>> -> memref<512xf32, #tpu.memory_space<any>>
    %34 = tpu.memref_slice %arg2[%c1_i32_23] : memref<4x!tpu.dma_semaphore, #tpu.memory_space<semaphore_mem>> -> memref<1x!tpu.dma_semaphore, #tpu.memory_space<semaphore_mem>>
    %35 = tpu.memref_squeeze %34 : memref<1x!tpu.dma_semaphore, #tpu.memory_space<semaphore_mem>> -> memref<!tpu.dma_semaphore, #tpu.memory_space<semaphore_mem>>
    tpu.wait_dma2 semaphore(%35 : memref<!tpu.dma_semaphore, #tpu.memory_space<semaphore_mem>>) src(%31 : memref<512xf32, #tpu.memory_space<any>>) dst(%33 : memref<512xf32, #tpu.memory_space<any>>)
    %c2_i32_26 = arith.constant 2 : i32
    %c2_i32_27 = arith.constant 2 : i32
    %c2_i32_28 = arith.constant 2 : i32
    %c0_i32_29 = arith.constant 0 : i32
    %36 = tpu.memref_slice %arg0[%c2_i32_26, %c0_i32_29] : memref<4x512xf32, #tpu.memory_space<any>> -> memref<1x512xf32, #tpu.memory_space<any>>
    %37 = tpu.memref_squeeze %36 : memref<1x512xf32, #tpu.memory_space<any>> -> memref<512xf32, #tpu.memory_space<any>>
    %c0_i32_30 = arith.constant 0 : i32
    %38 = tpu.memref_slice %arg1[%c2_i32_27, %c0_i32_30] : memref<4x512xf32, #tpu.memory_space<any>> -> memref<1x512xf32, #tpu.memory_space<any>>
    %39 = tpu.memref_squeeze %38 : memref<1x512xf32, #tpu.memory_space<any>> -> memref<512xf32, #tpu.memory_space<any>>
    %40 = tpu.memref_slice %arg2[%c2_i32_28] : memref<4x!tpu.dma_semaphore, #tpu.memory_space<semaphore_mem>> -> memref<1x!tpu.dma_semaphore, #tpu.memory_space<semaphore_mem>>
    %41 = tpu.memref_squeeze %40 : memref<1x!tpu.dma_semaphore, #tpu.memory_space<semaphore_mem>> -> memref<!tpu.dma_semaphore, #tpu.memory_space<semaphore_mem>>
    tpu.wait_dma2 semaphore(%41 : memref<!tpu.dma_semaphore, #tpu.memory_space<semaphore_mem>>) src(%37 : memref<512xf32, #tpu.memory_space<any>>) dst(%39 : memref<512xf32, #tpu.memory_space<any>>)
    %c3_i32_31 = arith.constant 3 : i32
    %c3_i32_32 = arith.constant 3 : i32
    %c3_i32_33 = arith.constant 3 : i32
    %c0_i32_34 = arith.constant 0 : i32
    %42 = tpu.memref_slice %arg0[%c3_i32_31, %c0_i32_34] : memref<4x512xf32, #tpu.memory_space<any>> -> memref<1x512xf32, #tpu.memory_space<any>>
    %43 = tpu.memref_squeeze %42 : memref<1x512xf32, #tpu.memory_space<any>> -> memref<512xf32, #tpu.memory_space<any>>
    %c0_i32_35 = arith.constant 0 : i32
    %44 = tpu.memref_slice %arg1[%c3_i32_32, %c0_i32_35] : memref<4x512xf32, #tpu.memory_space<any>> -> memref<1x512xf32, #tpu.memory_space<any>>
    %45 = tpu.memref_squeeze %44 : memref<1x512xf32, #tpu.memory_space<any>> -> memref<512xf32, #tpu.memory_space<any>>
    %46 = tpu.memref_slice %arg2[%c3_i32_33] : memref<4x!tpu.dma_semaphore, #tpu.memory_space<semaphore_mem>> -> memref<1x!tpu.dma_semaphore, #tpu.memory_space<semaphore_mem>>
    %47 = tpu.memref_squeeze %46 : memref<1x!tpu.dma_semaphore, #tpu.memory_space<semaphore_mem>> -> memref<!tpu.dma_semaphore, #tpu.memory_space<semaphore_mem>>
    tpu.wait_dma2 semaphore(%47 : memref<!tpu.dma_semaphore, #tpu.memory_space<semaphore_mem>>) src(%43 : memref<512xf32, #tpu.memory_space<any>>) dst(%45 : memref<512xf32, #tpu.memory_space<any>>)
    return
  }
}

</mosaic_0001>

<bundles_post_ra>
// kernel: tpu_custom_call.1
= control target key start
LH: loop header
LB: loop body
LE: loop exit
PB: predicated region body
PF: predicated region fallthrough
CT: control target
= control target key end

     0   :  { %s122_s6 = smov 64   ;;  %s123_s7 = smov 1   ;;  %s164_s0 = inlined_call_operand.hbm [shape: f32[4,512], index: 0, kind: input, shape index: {}]   ;;  %s165_s1 = inlined_call_operand.hbm [shape: f32[4,512], index: 1, kind: output, shape index: {}]  }
   0x1   :  { %12 = sst [smem:[#allocation4]] %s122_s6  ;;  %s124_s8 = smov [#allocation2]  }
   0x2   :  { %14 = sst [smem:[#allocation4 + $0x1]] %s122_s6  ;;  %s125_s9 = smov 131072  }
   0x3   :  { %16 = sst [smem:[#allocation4 + $0x2]] %s123_s7  ;;  %s126_s10 = smov 0  }
   0x4   :  { %18 = dma.general %s164_s0, 64, %s165_s1, %s124_s8, %s125_s9, [#allocation4], %s126_s10, 0  }
   0x5   :  { %28 = sst [smem:[#allocation6]] %s122_s6  ;;  %s19_s17 = scalar_lea.hbm %s164_s0, 16 }
   0x6   :  { %30 = sst [smem:[#allocation6 + $0x1]] %s122_s6  ;;  %s20_s20 = scalar_lea.hbm %s165_s1, 16 }
   0x7   :  { %32 = sst [smem:[#allocation6 + $0x2]] %s123_s7  ;;  %s127_s21 = smov [#allocation2 + $0x1]  }
   0x8   :  { %34 = dma.general %s19_s17, 64, %s20_s20, %s127_s21, %s125_s9, [#allocation6], %s126_s10, 0  }
   0x9   :  { %44 = sst [smem:[#allocation8]] %s122_s6  ;;  %s35_s24 = scalar_lea.hbm %s164_s0, 32 }
   0xa   :  { %46 = sst [smem:[#allocation8 + $0x1]] %s122_s6  ;;  %s36_s27 = scalar_lea.hbm %s165_s1, 32 }
   0xb   :  { %48 = sst [smem:[#allocation8 + $0x2]] %s123_s7  ;;  %s128_s28 = smov [#allocation2 + $0x2]  }
   0xc   :  { %50 = dma.general %s35_s24, 64, %s36_s27, %s128_s28, %s125_s9, [#allocation8], %s126_s10, 0  }
   0xd   :  { %60 = sst [smem:[#allocation10]] %s122_s6  ;;  %s51_s2 = scalar_lea.hbm %s164_s0, 48 }
   0xe   :  { %62 = sst [smem:[#allocation10 + $0x1]] %s122_s6  ;;  %s52_s5 = scalar_lea.hbm %s165_s1, 48 }
   0xf   :  { %64 = sst [smem:[#allocation10 + $0x2]] %s123_s7  ;;  %s129_s8 = smov [#allocation2 + $0x3]  }
  0x10   :  { %66 = dma.general %s51_s2, 64, %s52_s5, %s129_s8, %s125_s9, [#allocation10], %s126_s10, 0  }
  0x11   :  { %114 = dma.done.wait [#allocation2], 64 }
  0x12   :  { %115 = vsyncadd [#allocation2], 4294967232 }
  0x13   :  { %116 = dma.done.wait [#allocation2 + $0x1], 64 }
  0x14   :  { %117 = vsyncadd [#allocation2 + $0x1], 4294967232 }
  0x15   :  { %118 = dma.done.wait [#allocation2 + $0x2], 64 }
  0x16   :  { %119 = vsyncadd [#allocation2 + $0x2], 4294967232 }
  0x17   :  { %120 = dma.done.wait [#allocation2 + $0x3], 64 }
  0x18   :  { %121 = vsyncadd [#allocation2 + $0x3], 4294967232 }
  0x19   :  { %75 = vsyncmov [#allocation2] }
  0x1c   :  { %s76_s11 = vpop.sfrf %75 }
  0x1d   :  { %p102_p0 = scmp.ne.s32.totalorder %s76_s11, 0 }
  0x1f   :  { %80 = shalt.err (%p102_p0)  }
  0x20   :  { %82 = vsyncmov [#allocation2 + $0x1] }
  0x23   :  { %s83_s0 = vpop.sfrf %82 }
  0x24   :  { %p103_p1 = scmp.ne.s32.totalorder %s83_s0, 0 }
  0x26   :  { %87 = shalt.err (%p103_p1)  }
  0x27   :  { %89 = vsyncmov [#allocation2 + $0x2] }
  0x2a   :  { %s90_s1 = vpop.sfrf %89 }
  0x2b   :  { %p104_p2 = scmp.ne.s32.totalorder %s90_s1, 0 }
  0x2d   :  { %94 = shalt.err (%p104_p2)  }
  0x2e   :  { %96 = vsyncmov [#allocation2 + $0x3] }
  0x31   :  { %s97_s6 = vpop.sfrf %96 }
  0x32   :  { %p105_p3 = scmp.ne.s32.totalorder %s97_s6, 0 }
  0x34   :  { %101 = shalt.err (%p105_p3)  }

</bundles_post_ra>
